<compile_context>
chip_gen: v6e
topology: v6e:2x2x1
jax: 0.10.0
libtpu: 0.0.40
codegen_flags: <defaults>
</compile_context>

<pallas_src>
import functools

import jax
import jax.numpy as jnp
from jax.experimental import pallas as pl
from jax.experimental.pallas import tpu as pltpu

P_DROP = 0.3
KEEP_PROB = 1.0 - P_DROP
_KEEP_THRESHOLD_U32 = int(round(KEEP_PROB * (2.0 ** 32)))  # P(keep) on u32 bits


def _nonlinear_kernel(seed_ref, x_ref, w_ref, b_ref, o_ref, *, apply_dropout):
    # ---- Linear (MXU, f32 accumulation) ----
    y = jnp.dot(x_ref[...], w_ref[...], preferred_element_type=jnp.float32)
    y = y + b_ref[...]                       # (1, bn) broadcast over (bm, bn)

    # ---- ReLU (VPU) ----
    y = jnp.maximum(y, 0.0)

    # ---- Dropout p=0.3 (inverted dropout: scale kept activations by 1/keep) ----
    # Stateless counter-based hash of (seed, global_row, global_col): mask is
    # independent of the tiling and needs no stateful TPU PRNG, so it also
    # lowers under interpret mode.
    # TODO(synk): matches torch.nn.Dropout *semantics*, not torch's RNG stream.
    if apply_dropout:
        bm, bn = o_ref.shape
        row = (jax.lax.broadcasted_iota(jnp.int32, (bm, bn), 0)
               + pl.program_id(1) * bm).astype(jnp.uint32)
        col = (jax.lax.broadcasted_iota(jnp.int32, (bm, bn), 1)
               + pl.program_id(0) * bn).astype(jnp.uint32)
        seed = seed_ref[0].astype(jnp.uint32)

        h = seed * jnp.uint32(0x9E3779B1)
        h = h ^ (row * jnp.uint32(0x85EBCA77))
        h = (h ^ (h >> 16)) * jnp.uint32(0x7FEB352D)
        h = h ^ (col * jnp.uint32(0xC2B2AE3D))
        h = (h ^ (h >> 15)) * jnp.uint32(0x846CA68B)
        h = h ^ (h >> 16)

        keep = h < jnp.uint32(_KEEP_THRESHOLD_U32)
        y = jnp.where(keep, y * (1.0 / KEEP_PROB), 0.0)

    o_ref[...] = y.astype(o_ref.dtype)


def _round_up(x, m):
    return -(-x // m) * m


def _choose_tiles(B, Cin, Cout, itemsize=4, vmem_budget=10 * 1024 * 1024):
    """Pick (block_m, block_n): lane-dense N tile, largest M tile under budget."""
    cout_p = _round_up(Cout, 128)
    if cout_p % 512 == 0:
        block_n = 512
    elif cout_p % 256 == 0:
        block_n = 256
    else:
        block_n = 128

    def vmem_need(bm):
        # double-buffered x / out tiles + (double-buffered) weight & bias tiles
        return itemsize * (2 * bm * Cin + 2 * bm * block_n
                           + 2 * Cin * block_n + 2 * block_n)

    bm_cap = min(1024, _round_up(B, 8))
    block_m = 8
    for cand in (bm_cap, 1024, 512, 256, 128, 64, 32, 16, 8):
        if cand <= bm_cap and vmem_need(cand) <= vmem_budget:
            block_m = cand
            break
    # TODO(synk): if Cin*block_n alone exceeds the budget (very large Cin) a
    # K-axis grid with a VMEM accumulator would be needed; not required here.
    return block_m, block_n


@functools.partial(jax.jit, static_argnames=("training",))
def nonlinear_for_flat(x, w_t, b, seed, *, training=True):
    """x: (B, Cin) f32; w_t: (Cin, Cout) f32; b: (1, Cout) f32; seed: (1,) i32."""
    B, Cin = x.shape
    Cout = w_t.shape[1]
    block_m, block_n = _choose_tiles(B, Cin, Cout)

    B_pad = _round_up(B, block_m)
    Cout_pad = _round_up(Cout, block_n)          # lane-dense output (>=128)

    x_p = jnp.pad(x, ((0, B_pad - B), (0, 0))) if B_pad != B else x
    w_p = jnp.pad(w_t, ((0, 0), (0, Cout_pad - Cout))) if Cout_pad != Cout else w_t
    b_p = jnp.pad(b, ((0, 0), (0, Cout_pad - Cout))) if Cout_pad != Cout else b

    # N outer, M inner: the weight/bias block index is constant over the inner
    # batch sweep, so Pallas does not re-fetch it per step.
    grid = (Cout_pad // block_n, B_pad // block_m)

    out = pl.pallas_call(
        functools.partial(_nonlinear_kernel, apply_dropout=training),
        out_shape=jax.ShapeDtypeStruct((B_pad, Cout_pad), x.dtype),
        grid_spec=pltpu.PrefetchScalarGridSpec(
            num_scalar_prefetch=1,               # seed lands in SMEM
            grid=grid,
            in_specs=[
                pl.BlockSpec((block_m, Cin), lambda j, i, s: (i, 0)),
                pl.BlockSpec((Cin, block_n), lambda j, i, s: (0, j)),
                pl.BlockSpec((1, block_n), lambda j, i, s: (0, j)),
            ],
            out_specs=pl.BlockSpec((block_m, block_n), lambda j, i, s: (i, j)),
        ),
        compiler_params=pltpu.CompilerParams(
            dimension_semantics=("parallel", "parallel"),
        ),
    )(seed, x_p, w_p, b_p)

    return out[:B, :Cout]


if __name__ == "__main__":
    # Small shapes implied by the module: flat (batch, channels) input.
    batch = 16
    input_channels = 32
    output_channels = 64

    key = jax.random.PRNGKey(0)
    kx, kw, kb = jax.random.split(key, 3)

    x = jax.random.normal(kx, (batch, input_channels), dtype=jnp.float32)

    # Deterministic parameter init mimicking nn.Linear (uniform +-1/sqrt(fan_in)).
    bound = 1.0 / (input_channels ** 0.5)
    w = jax.random.uniform(
        kw, (output_channels, input_channels), minval=-bound, maxval=bound,
        dtype=jnp.float32)
    b = jax.random.uniform(
        kb, (output_channels,), minval=-bound, maxval=bound, dtype=jnp.float32)

    w_t = jnp.transpose(w)          # (Cin, Cout) for the kernel
    b2d = b.reshape(1, -1)          # (1, Cout)
    seed = jnp.array([1234], dtype=jnp.int32)

    # Training mode (dropout active).
    out = nonlinear_for_flat(x, w_t, b2d, seed, training=True)
    out = jax.block_until_ready(out)
    assert out.shape == (batch, output_channels)
    assert bool(jnp.all(out >= 0.0))            # ReLU + non-negative scaling

    # Eval mode (dropout is identity) cross-checked against plain jnp.
    out_eval = jax.block_until_ready(
        nonlinear_for_flat(x, w_t, b2d, seed, training=False))
    ref_eval = jnp.maximum(x @ w_t + b2d, 0.0)
    assert bool(jnp.allclose(out_eval, ref_eval, atol=1e-4, rtol=1e-4))

    # Dropout should have zeroed some activations that survive ReLU.
    assert float(jnp.mean(out == 0.0)) > float(jnp.mean(out_eval == 0.0))

    print("KERNEL_OK")
</pallas_src>

<mosaic_0001>
module attributes {stable_mosaic.version = 11 : i64} {
  func.func @_nonlinear_kernel(%arg0: i32, %arg1: i32, %arg2: memref<1xi32, #tpu.memory_space<smem>>, %arg3: memref<16x32xf32, #tpu.memory_space<vmem>>, %arg4: memref<32x128xf32, #tpu.memory_space<vmem>>, %arg5: memref<1x128xf32, #tpu.memory_space<vmem>>, %arg6: memref<16x128xf32, #tpu.memory_space<vmem>>) attributes {dimension_semantics = [#tpu.dimension_semantics<parallel>, #tpu.dimension_semantics<parallel>], iteration_bounds = array<i64: 1, 1>, scalar_prefetch = 1 : i64, scratch_operands = 0 : i64, tpu.core_type = #tpu.core_type<tc>, window_params = [{transform_indices = @transform_0, window_bounds = array<i64: 16, 32>}, {transform_indices = @transform_1, window_bounds = array<i64: 32, 128>}, {transform_indices = @transform_2, window_bounds = array<i64: 1, 128>}, {transform_indices = @transform_3, window_bounds = array<i64: 16, 128>}]} {
    %c0 = arith.constant 0 : index
    %c0_0 = arith.constant 0 : index
    %0 = vector.load %arg3[%c0, %c0_0] : memref<16x32xf32, #tpu.memory_space<vmem>>, vector<16x32xf32>
    %c0_1 = arith.constant 0 : index
    %c0_2 = arith.constant 0 : index
    %1 = vector.load %arg4[%c0_1, %c0_2] : memref<32x128xf32, #tpu.memory_space<vmem>>, vector<32x128xf32>
    %cst = arith.constant dense<0.000000e+00> : vector<16x128xf32>
    %2 = tpu.matmul %0, %1, %cst {dimension_numbers = #tpu.dot_dimension_numbers<[1], [0], [0], [1], [0, 0, 1, 1], [], []>} : vector<16x32xf32>, vector<32x128xf32>, vector<16x128xf32> -> vector<16x128xf32>
    %c0_3 = arith.constant 0 : index
    %c0_4 = arith.constant 0 : index
    %3 = vector.load %arg5[%c0_3, %c0_4] : memref<1x128xf32, #tpu.memory_space<vmem>>, vector<1x128xf32>
    %4 = vector.broadcast %3 : vector<1x128xf32> to vector<16x128xf32>
    %5 = arith.addf %2, %4 : vector<16x128xf32>
    %cst_5 = arith.constant 0.000000e+00 : f32
    %6 = vector.broadcast %cst_5 : f32 to vector<16x128xf32>
    %7 = arith.maximumf %5, %6 : vector<16x128xf32>
    %8 = tpu.iota {dimensions = array<i32: 0>} : vector<16x128xi32>
    %c16_i32 = arith.constant 16 : i32
    %9 = arith.muli %arg1, %c16_i32 : i32
    %10 = vector.broadcast %9 : i32 to vector<16x128xi32>
    %11 = arith.addi %8, %10 : vector<16x128xi32>
    %12 = tpu.iota {dimensions = array<i32: 1>} : vector<16x128xi32>
    %c128_i32 = arith.constant 128 : i32
    %13 = arith.muli %arg0, %c128_i32 : i32
    %14 = vector.broadcast %13 : i32 to vector<16x128xi32>
    %15 = arith.addi %12, %14 : vector<16x128xi32>
    %c0_6 = arith.constant 0 : index
    %16 = memref.load %arg2[%c0_6] : memref<1xi32, #tpu.memory_space<smem>>
    %c-1640531535_i32 = arith.constant -1640531535 : i32
    %17 = arith.muli %16, %c-1640531535_i32 : i32
    %c-2048144777_i32 = arith.constant -2048144777 : i32
    %18 = vector.broadcast %c-2048144777_i32 : i32 to vector<16x128xi32>
    %19 = arith.muli %11, %18 : vector<16x128xi32>
    %20 = vector.broadcast %17 : i32 to vector<16x128xi32>
    %21 = arith.xori %20, %19 : vector<16x128xi32>
    %c16_i32_7 = arith.constant 16 : i32
    %22 = vector.broadcast %c16_i32_7 : i32 to vector<16x128xi32>
    %23 = arith.shrui %21, %22 : vector<16x128xi32>
    %24 = arith.xori %21, %23 : vector<16x128xi32>
    %c2146121005_i32 = arith.constant 2146121005 : i32
    %25 = vector.broadcast %c2146121005_i32 : i32 to vector<16x128xi32>
    %26 = arith.muli %24, %25 : vector<16x128xi32>
    %c-1028477379_i32 = arith.constant -1028477379 : i32
    %27 = vector.broadcast %c-1028477379_i32 : i32 to vector<16x128xi32>
    %28 = arith.muli %15, %27 : vector<16x128xi32>
    %29 = arith.xori %26, %28 : vector<16x128xi32>
    %c15_i32 = arith.constant 15 : i32
    %30 = vector.broadcast %c15_i32 : i32 to vector<16x128xi32>
    %31 = arith.shrui %29, %30 : vector<16x128xi32>
    %32 = arith.xori %29, %31 : vector<16x128xi32>
    %c-2073254261_i32 = arith.constant -2073254261 : i32
    %33 = vector.broadcast %c-2073254261_i32 : i32 to vector<16x128xi32>
    %34 = arith.muli %32, %33 : vector<16x128xi32>
    %c16_i32_8 = arith.constant 16 : i32
    %35 = vector.broadcast %c16_i32_8 : i32 to vector<16x128xi32>
    %36 = arith.shrui %34, %35 : vector<16x128xi32>
    %37 = arith.xori %34, %36 : vector<16x128xi32>
    %c-1288490189_i32 = arith.constant -1288490189 : i32
    %38 = vector.broadcast %c-1288490189_i32 : i32 to vector<16x128xi32>
    %39 = arith.cmpi ult, %37, %38 : vector<16x128xi32>
    %cst_9 = arith.constant 1.42857146 : f32
    %40 = vector.broadcast %cst_9 : f32 to vector<16x128xf32>
    %41 = arith.mulf %7, %40 : vector<16x128xf32>
    %cst_10 = arith.constant 0.000000e+00 : f32
    %42 = vector.broadcast %cst_10 : f32 to vector<16x128xf32>
    %43 = arith.select %39, %41, %42 : vector<16x128xi1>, vector<16x128xf32>
    %c0_11 = arith.constant 0 : index
    %c0_12 = arith.constant 0 : index
    %44 = vector.load %arg6[%c0_11, %c0_12] : memref<16x128xf32, #tpu.memory_space<vmem>>, vector<16x128xf32>
    tpu.vector_store %arg6[%c0_11, %c0_12], %43 {strides = array<i32>} : memref<16x128xf32, #tpu.memory_space<vmem>>, vector<16x128xf32>,
    return
  }
  func.func @transform_0(%arg0: i32, %arg1: i32, %arg2: memref<1xi32, #tpu.memory_space<smem>>) -> (i32, i32) {
    %c0_i32 = arith.constant 0 : i32
    %c0_i32_0 = arith.constant 0 : i32
    return %arg1, %c0_i32 : i32, i32
  }
  func.func @transform_1(%arg0: i32, %arg1: i32, %arg2: memref<1xi32, #tpu.memory_space<smem>>) -> (i32, i32) {
    %c0_i32 = arith.constant 0 : i32
    %c0_i32_0 = arith.constant 0 : i32
    return %c0_i32, %arg0 : i32, i32
  }
  func.func @transform_2(%arg0: i32, %arg1: i32, %arg2: memref<1xi32, #tpu.memory_space<smem>>) -> (i32, i32) {
    %c0_i32 = arith.constant 0 : i32
    %c0_i32_0 = arith.constant 0 : i32
    return %c0_i32, %arg0 : i32, i32
  }
  func.func @transform_3(%arg0: i32, %arg1: i32, %arg2: memref<1xi32, #tpu.memory_space<smem>>) -> (i32, i32) {
    %c0_i32 = arith.constant 0 : i32
    return %arg1, %arg0 : i32, i32
  }
}

</mosaic_0001>

<bundles_post_ra>
// kernel: nonlinear_for_flat.1
= control target key start
LH: loop header
LB: loop body
LE: loop exit
PB: predicated region body
PF: predicated region fallthrough
CT: control target
= control target key end

     0   :  { %vm30_vm0 = vcmask 261120   ;;  %s276_s0 = inlined_call_operand.<no memory space> [shape: s32[1], index: 0, kind: input, shape index: {}]   ;;  %s277_s1 = inlined_call_operand.vmem [shape: f32[16,32], index: 1, kind: input, shape index: {}]   ;;  %s278_s2 = inlined_call_operand.vmem [shape: f32[32,128], index: 2, kind: input, shape index: {}]   ;;  %s279_s3 = inlined_call_operand.vmem [shape: f32[1,128], index: 3, kind: input, shape index: {}]   ;;  %s280_s4 = inlined_call_operand.hbm [shape: f32[16,128], index: 4, kind: output, shape index: {}]  }
   0x1   :  { %v22_v0 = vld [vmem:[%s278_s2 + $0x18] sm:$0xff]  ;;  %v21_v1 = vld [vmem:[%s278_s2 + $0x10] sm:$0xff]  ;;  %v17_v2 = vld [vmem:[%s277_s1] sm:$0xff] }
   0x2   :  { %185 = vmatprep.subr.mxu0 %v22_v0  ;;  %v20_v3 = vld [vmem:[%s278_s2 + $0x8] sm:$0xff]  ;;  %193 = vmatprep.mubr.msk.f32.mxu0 %vm30_vm0, %v17_v2 }
   0x3   :  { %186 = vmatpush3.msra.mxu0 %v22_v0 }
   0x4   :  { %10 = vsyncpa [#allocation5], 0  ;;  %187 = vmatprep.subr.mxu0 %v21_v1  ;;  %v19_v4 = vld [vmem:[%s278_s2] sm:$0xff]  ;;  %v18_v5 = vld [vmem:[%s277_s1 + $0x8] sm:$0xff]  ;;  %v114_v6 = vlaneseq  ;;  %s127_s29 = smul.u32 2654435761, %s276_s0 }
   0x5   :  { %188 = vmatpush3.msra.mxu0 %v21_v1  ;;  %v176_v31 = vld [vmem:[%s279_s3] ss:$0 sm:$0xff]  ;;  %s221_s2 = smov [#allocation4]  }
   0x6   :  { %189 = vmatprep.subr.mxu0 %v20_v3  ;;  %v115_v7 = vshrl.u32 %v114_v6, 7  ;;  %v130_v10 = vstv %s127_s29  ;;  %v122_v16 = vand.u32 127, %v114_v6  ;;  %s165_s30 = sshll.u32 %s221_s2, 4  ;;  %s166_s30 = int_to_ptr.vmem [resolvable:$true] %s165_s30 }
   0x7   :  { %190 = vmatpush3.msra.mxu0 %v20_v3  ;;  %s199_s3 = scalar_lea.vmem %s166_s30, 256  ;;  %p204_p1 = scmp.lt.s32.totalorder %s166_s30, %s166_s30 }
   0x8   :  { %191 = vmatprep.subr.mxu0 %v19_v4  ;;  %v116_v8 = vadd.s32 8, %v115_v7  ;;  %v128_v11 = vmul.u32 2246822519, %v115_v7  ;;  %v139_v20 = vmul.u32 3266489917, %v122_v16  ;;  %p200_p0 = scmp.ne.s32.totalorder %s166_s30, %s199_s3  ;;  %p205_p2 = scmp.lt.s32.totalorder %s199_s3, %s199_s3 }
   0x9   :  { %192 = vmatpush3.msra.mxu0 %v19_v4 }
   0xa   :  { %194 = vmatmul.mubr.msk.f32.vlgmr.msra.gmra.mxu0 %vm30_vm0, %v18_v5  ;;  %v129_v9 = vmul.u32 2246822519, %v116_v8  ;;  %v131_v13 = vxor.u32 %v130_v10, %v128_v11  ;;  %p206_p3 = por %p205_p2, %p204_p1 }
   0xc   :  { %v132_v12 = vxor.u32 %v130_v10, %v129_v9  ;;  %v133_v15 = vshrl.u32 %v131_v13, 16  ;;  %p207_p4 = pnand %p206_p3, %p200_p0 }
   0xe   :  { %v134_v14 = vshrl.u32 %v132_v12, 16  ;;  %v135_v18 = vxor.u32 %v133_v15, %v131_v13 }
  0x10   :  { %v136_v17 = vxor.u32 %v134_v14, %v132_v12  ;;  %v137_v21 = vmul.u32 2146121005, %v135_v18 }
  0x12   :  { %v138_v19 = vmul.u32 2146121005, %v136_v17  ;;  %v140_v23 = vxor.u32 %v139_v20, %v137_v21 }
  0x14   :  { %v141_v22 = vxor.u32 %v139_v20, %v138_v19  ;;  %v142_v25 = vshrl.u32 %v140_v23, 15 }
  0x16   :  { %v143_v24 = vshrl.u32 %v141_v22, 15  ;;  %v144_v27 = vxor.u32 %v142_v25, %v140_v23 }
  0x18   :  { %v145_v26 = vxor.u32 %v143_v24, %v141_v22  ;;  %v146_v29 = vmul.u32 2221713035, %v144_v27 }
  0x1a   :  { %v147_v28 = vmul.u32 2221713035, %v145_v26  ;;  %v148_v32 = vshrl.u32 %v146_v29, 16 }
  0x1c   :  { %v149_v30 = vshrl.u32 %v147_v28, 16  ;;  %v150_v37 = vxor.u32 %v148_v32, %v146_v29 }
  0x1e   :  { %v151_v34 = vxor.u32 %v149_v30, %v147_v28  ;;  %vm152_vm2 = vcmp.lt.u32.totalorder %v150_v37, 3006477107 }
  0x20   :  { %vm153_vm1 = vcmp.lt.u32.totalorder %v151_v34, 3006477107 }
  0xca   :  { %v195_v33 = vpop.f32.mrf.mxu0 }
  0xcb   :  { %v109_v35 = vadd.f32 %v195_v33, %v176_v31 }
  0xcc   :  { %v103_v36 = vpop.f32.mrf.mxu0 }
  0xcd   :  { %v113_v38 = vmax.f32 %v109_v35, 0.0  ;;  %v104_v39 = vadd.f32 %v176_v31, %v103_v36 }
  0xcf   :  { %v155_v40 = vmul.f32 1.4285715, %v113_v38  ;;  %v112_v41 = vmax.f32 %v104_v39, 0.0 }
  0xd1   :  { %v157_v42 = vsel %vm153_vm1, %v155_v40, 0.0  ;;  %v154_v43 = vmul.f32 1.4285715, %v112_v41 }
  0xd2   :  { %159 = vst [vmem:[#allocation4 + $0x8] sm:$0xff] %v157_v42 }
  0xd3   :  { %v156_v44 = vsel %vm152_vm2, %v154_v43, 0.0 }
  0xd4   :  { %158 = vst [vmem:[#allocation4] sm:$0xff] %v156_v44 }
  0xd5   :  { %210 = shalt.err (!%p207_p4)
}
  0xd6   :  { %s222_s5 = smov 128   ;;  %s223_s6 = smov 8  }
  0xd7   :  { %171 = dma.vmem_to_hbm [thread:$0]  %s166_s30, 256, %s280_s4, [#allocation5], %s222_s5, %s222_s5, %s223_s6  }
  0xd8   :  { %219 = dma.done.wait [#allocation5], 256  }
  0xd9   :  { %220 = vsyncadd [#allocation5], 4294967040 }
  0xda   :  { %175 = vsyncpa [#allocation5], 1 }

</bundles_post_ra>
